<compile_context>
chip_gen: v5e
topology: v5e:2x2
jax: 0.10.0
libtpu: 0.0.40
codegen_flags: <defaults>
</compile_context>

<pallas_src>
import functools

import jax
import jax.numpy as jnp
from jax import lax
from jax.experimental import pallas as pl
from jax.experimental.pallas import tpu as pltpu


def _bdd_drive_kernel(p_ref, gt_ref, out_ref, *,
                      course_std, course_mean, accel_std, accel_mean,
                      normalize, batch_size, b_tile):
    """Per-tile partial |pred - gt| sums.

    p_ref  : VMEM [2, b_tile]  row 0 = course preds, row 1 = accel preds
    gt_ref : VMEM [2, b_tile]  row 0 = gt course,    row 1 = gt accel
    out_ref: VMEM [1, 2, 128]  partial sums (lane-broadcast), row 0/1.
    """
    p = p_ref[...].astype(jnp.float32)      # cast in-kernel (native dtype in)
    gt = gt_ref[...].astype(jnp.float32)

    row = lax.broadcasted_iota(jnp.int32, p.shape, 0)
    is_course = row == 0

    if normalize:  # static python bool (cri_out['normalize_outputs'])
        scale = jnp.where(is_course, jnp.float32(course_std),
                          jnp.float32(accel_std))
        bias = jnp.where(is_course, jnp.float32(course_mean),
                         jnp.float32(accel_mean))
        p = p * scale + bias

    # Mask lanes past the true batch size (inputs are zero-padded up to a
    # multiple of b_tile in the wrapper).
    lane = lax.broadcasted_iota(jnp.int32, p.shape, 1)
    gidx = pl.program_id(0) * b_tile + lane
    d = jnp.where(gidx < batch_size, jnp.abs(p - gt), 0.0)        # (2, b_tile)

    s = jnp.sum(d, axis=1, keepdims=True)                          # (2, 1)
    # Lane-broadcast so the write-back is a plain unmasked (1,2,128) store;
    # the wrapper only reads lane 0.
    out_ref[...] = jnp.broadcast_to(s[None, :, :], out_ref.shape)


def bdd_drive_forward(preds, course_value, accelerator_value,
                      course_stat, accel_stat, normalize_outputs,
                      max_tile=4096):
    """JAX/Pallas equivalent of BDDDrive.forward.

    preds             : (B, 2)  net_out['preds']            (any float dtype)
    course_value      : (B, T)  batch['course_value']       (uses column 0)
    accelerator_value : (B, T)  batch['accelerator_value']  (uses column 0)
    course_stat/accel_stat : dicts with python-float 'std', 'mean'
    normalize_outputs : python bool (cri_out['normalize_outputs'])
    """
    B = preds.shape[0]

    # Layout plumbing (fused by XLA, ~free): pack only the data the kernel
    # needs, lane-dense, at native dtype.
    p2 = preds.T                                                   # (2, B)
    gt2 = jnp.stack([course_value[:, 0], accelerator_value[:, 0]], axis=0)

    b_tile = min(int(max_tile), ((B + 127) // 128) * 128)          # lane tile
    num_tiles = (B + b_tile - 1) // b_tile
    b_pad = num_tiles * b_tile
    if b_pad != B:
        p2 = jnp.pad(p2, ((0, 0), (0, b_pad - B)))
        gt2 = jnp.pad(gt2, ((0, 0), (0, b_pad - B)))

    kernel = functools.partial(
        _bdd_drive_kernel,
        course_std=float(course_stat['std']),
        course_mean=float(course_stat['mean']),
        accel_std=float(accel_stat['std']),
        accel_mean=float(accel_stat['mean']),
        normalize=bool(normalize_outputs),
        batch_size=B,
        b_tile=b_tile,
    )

    # Per-tile f32 partial sums; 'parallel' axis so both TCs can participate
    # on v7x and input DMAs are double-buffered across steps. VMEM per step
    # is ~4 * 2 * b_tile * 4B (few hundred KiB max) -> fits every chip's
    # default scoped-VMEM limit (v5e 16 MiB included).
    partials = pl.pallas_call(
        kernel,
        grid=(num_tiles,),
        out_shape=jax.ShapeDtypeStruct((num_tiles, 2, 128), jnp.float32),
        in_specs=[
            pl.BlockSpec((2, b_tile), lambda i: (0, i)),   # preds  (2, b_pad)
            pl.BlockSpec((2, b_tile), lambda i: (0, i)),   # gt     (2, b_pad)
        ],
        out_specs=pl.BlockSpec((1, 2, 128), lambda i: (i, 0, 0)),
        compiler_params=pltpu.CompilerParams(
            dimension_semantics=("parallel",)),
    )(p2, gt2)

    # Tiny final reduction (num_tiles * 2 floats) done by XLA in the wrapper.
    sums = jnp.sum(partials[:, :, 0], axis=0)                      # (2,)
    maes = sums / jnp.float32(B)
    return {'accel_mae': maes[1], 'course_mae': maes[0]}


def _reference(preds, course_value, accelerator_value,
               course_stat, accel_stat, normalize_outputs):
    pc = preds[:, 0].astype(jnp.float32)
    pa = preds[:, 1].astype(jnp.float32)
    if normalize_outputs:
        pc = pc * course_stat['std'] + course_stat['mean']
        pa = pa * accel_stat['std'] + accel_stat['mean']
    gc = course_value[:, 0].astype(jnp.float32)
    ga = accelerator_value[:, 0].astype(jnp.float32)
    return (jnp.mean(jnp.abs(pc - gc)), jnp.mean(jnp.abs(pa - ga)))


if __name__ == "__main__":
    key = jax.random.PRNGKey(0)

    # Deterministic synthetic dataset statistics (dataset.course_stat/accel_stat).
    course_stat = {'mean': 1.5, 'std': 12.0}
    accel_stat = {'mean': 0.25, 'std': 3.0}

    # --- small single-tile case -------------------------------------------
    B, T = 8, 4
    k1, k2, k3 = jax.random.split(key, 3)
    preds = jax.random.normal(k1, (B, 2), dtype=jnp.float32)
    course_value = jax.random.normal(k2, (B, T), dtype=jnp.float32) * 5.0
    accelerator_value = jax.random.normal(k3, (B, T), dtype=jnp.float32) * 2.0

    for normalize in (True, False):
        out = bdd_drive_forward(preds, course_value, accelerator_value,
                                course_stat, accel_stat, normalize)
        out = jax.block_until_ready(out)
        ref_c, ref_a = _reference(preds, course_value, accelerator_value,
                                  course_stat, accel_stat, normalize)
        assert jnp.allclose(out['course_mae'], ref_c, atol=1e-5), (
            normalize, out['course_mae'], ref_c)
        assert jnp.allclose(out['accel_mae'], ref_a, atol=1e-5), (
            normalize, out['accel_mae'], ref_a)

    # --- multi-tile (grid + masking) case, bf16 inputs ---------------------
    B2, T2 = 300, 6
    k4, k5, k6 = jax.random.split(jax.random.PRNGKey(1), 3)
    preds2 = jax.random.normal(k4, (B2, 2), dtype=jnp.bfloat16)
    course2 = (jax.random.normal(k5, (B2, T2), dtype=jnp.float32) * 5.0
               ).astype(jnp.bfloat16)
    accel2 = (jax.random.normal(k6, (B2, T2), dtype=jnp.float32) * 2.0
              ).astype(jnp.bfloat16)

    out2 = bdd_drive_forward(preds2, course2, accel2,
                             course_stat, accel_stat, True, max_tile=128)
    out2 = jax.block_until_ready(out2)
    ref_c2, ref_a2 = _reference(preds2, course2, accel2,
                                course_stat, accel_stat, True)
    assert jnp.allclose(out2['course_mae'], ref_c2, rtol=1e-3, atol=1e-3), (
        out2['course_mae'], ref_c2)
    assert jnp.allclose(out2['accel_mae'], ref_a2, rtol=1e-3, atol=1e-3), (
        out2['accel_mae'], ref_a2)

    print("KERNEL_OK")
</pallas_src>

<mosaic_0001>
module attributes {stable_mosaic.version = 11 : i64} {
  func.func @_bdd_drive_kernel(%arg0: i32, %arg1: memref<2x128xf32, #tpu.memory_space<vmem>>, %arg2: memref<2x128xf32, #tpu.memory_space<vmem>>, %arg3: memref<1x2x128xf32, #tpu.memory_space<vmem>>) attributes {dimension_semantics = [#tpu.dimension_semantics<parallel>], iteration_bounds = array<i64: 1>, scalar_prefetch = 0 : i64, scratch_operands = 0 : i64, tpu.core_type = #tpu.core_type<tc>, window_params = [{transform_indices = @transform_0, window_bounds = array<i64: 2, 128>}, {transform_indices = @transform_1, window_bounds = array<i64: 2, 128>}, {transform_indices = @transform_2, window_bounds = array<i64: 1, 2, 128>}]} {
    %c0 = arith.constant 0 : index
    %c0_0 = arith.constant 0 : index
    %0 = vector.load %arg1[%c0, %c0_0] : memref<2x128xf32, #tpu.memory_space<vmem>>, vector<2x128xf32>
    %c0_1 = arith.constant 0 : index
    %c0_2 = arith.constant 0 : index
    %1 = vector.load %arg2[%c0_1, %c0_2] : memref<2x128xf32, #tpu.memory_space<vmem>>, vector<2x128xf32>
    %2 = tpu.iota {dimensions = array<i32: 0>} : vector<2x128xi32>
    %c0_i32 = arith.constant 0 : i32
    %3 = vector.broadcast %c0_i32 : i32 to vector<2x128xi32>
    %4 = arith.cmpi eq, %2, %3 : vector<2x128xi32>
    %cst = arith.constant 1.200000e+01 : f32
    %cst_3 = arith.constant 3.000000e+00 : f32
    %5 = vector.broadcast %cst : f32 to vector<2x128xf32>
    %6 = vector.broadcast %cst_3 : f32 to vector<2x128xf32>
    %7 = arith.select %4, %5, %6 : vector<2x128xi1>, vector<2x128xf32>
    %cst_4 = arith.constant 1.500000e+00 : f32
    %cst_5 = arith.constant 2.500000e-01 : f32
    %8 = vector.broadcast %cst_4 : f32 to vector<2x128xf32>
    %9 = vector.broadcast %cst_5 : f32 to vector<2x128xf32>
    %10 = arith.select %4, %8, %9 : vector<2x128xi1>, vector<2x128xf32>
    %11 = arith.mulf %0, %7 : vector<2x128xf32>
    %12 = arith.addf %11, %10 : vector<2x128xf32>
    %13 = tpu.iota {dimensions = array<i32: 1>} : vector<2x128xi32>
    %c128_i32 = arith.constant 128 : i32
    %14 = arith.muli %arg0, %c128_i32 : i32
    %15 = vector.broadcast %14 : i32 to vector<2x128xi32>
    %16 = arith.addi %15, %13 : vector<2x128xi32>
    %c8_i32 = arith.constant 8 : i32
    %17 = vector.broadcast %c8_i32 : i32 to vector<2x128xi32>
    %18 = arith.cmpi slt, %16, %17 : vector<2x128xi32>
    %19 = arith.subf %12, %1 : vector<2x128xf32>
    %20 = math.absf %19 : vector<2x128xf32>
    %cst_6 = arith.constant 0.000000e+00 : f32
    %21 = vector.broadcast %cst_6 : f32 to vector<2x128xf32>
    %22 = arith.select %18, %20, %21 : vector<2x128xi1>, vector<2x128xf32>
    %cst_7 = arith.constant dense<0.000000e+00> : vector<2xf32>
    %23 = vector.multi_reduction <add>, %22, %cst_7 [1] : vector<2x128xf32> to vector<2xf32>
    %24 = vector.shape_cast %23 : vector<2xf32> to vector<2x1xf32>
    %25 = vector.shape_cast %24 : vector<2x1xf32> to vector<1x2x1xf32>
    %26 = vector.shape_cast %25 : vector<1x2x1xf32> to vector<1x2x1xf32>
    %27 = vector.broadcast %26 : vector<1x2x1xf32> to vector<1x2x128xf32>
    %c0_8 = arith.constant 0 : index
    %c0_9 = arith.constant 0 : index
    %c0_10 = arith.constant 0 : index
    %28 = vector.load %arg3[%c0_8, %c0_9, %c0_10] : memref<1x2x128xf32, #tpu.memory_space<vmem>>, vector<1x2x128xf32>
    tpu.vector_store %arg3[%c0_8, %c0_9, %c0_10], %27 {strides = array<i32>} : memref<1x2x128xf32, #tpu.memory_space<vmem>>, vector<1x2x128xf32>,
    return
  }
  func.func @transform_0(%arg0: i32) -> (i32, i32) {
    %c0_i32 = arith.constant 0 : i32
    %c0_i32_0 = arith.constant 0 : i32
    return %c0_i32, %arg0 : i32, i32
  }
  func.func @transform_1(%arg0: i32) -> (i32, i32) {
    %c0_i32 = arith.constant 0 : i32
    %c0_i32_0 = arith.constant 0 : i32
    return %c0_i32, %arg0 : i32, i32
  }
  func.func @transform_2(%arg0: i32) -> (i32, i32, i32) {
    %c0_i32 = arith.constant 0 : i32
    %c0_i32_0 = arith.constant 0 : i32
    %c0_i32_1 = arith.constant 0 : i32
    return %arg0, %c0_i32, %c0_i32_0 : i32, i32, i32
  }
}

</mosaic_0001>

<bundles_post_ra>
// kernel: tpu_custom_call.1
= control target key start
LH: loop header
LB: loop body
LE: loop exit
PB: predicated region body
PF: predicated region fallthrough
CT: control target
= control target key end

     0   :  { %7 = vsyncpa [#allocation3], 0  ;;  %s193_s0 = inlined_call_operand.hbm [shape: f32[2,128], index: 0, kind: input, shape index: {}]   ;;  %s194_s1 = inlined_call_operand.hbm [shape: f32[2,128], index: 1, kind: input, shape index: {}]   ;;  %s195_s2 = inlined_call_operand.hbm [shape: f32[1,2,128], index: 2, kind: output, shape index: {}]  }
   0x1   :  { %8 = vsyncpa [#allocation6], 0 }
   0x2   :  { %9 = vsyncpa [#allocation4], 0  ;;  %s15_s11 = sshll.u32 %s193_s0, 4  ;;  %s164_s12 = smov [#allocation2]   ;;  %s16_s11 = int_to_ptr.hbm [resolvable:$true] %s15_s11 }
   0x3   :  { %s17_s13 = sshll.u32 %s164_s12, 4  ;;  %s26_s16 = sshll.u32 %s194_s1, 4  ;;  %s18_s13 = int_to_ptr.vmem [resolvable:$true] %s17_s13  ;;  %s27_s16 = int_to_ptr.hbm [resolvable:$true] %s26_s16 }
   0x4   :  { %20 = dma.hbm_to_vmem [thread:$0]  %s16_s11, 32, %s18_s13, [#allocation3]  }
   0x5   :  { %s165_s17 = smov [#allocation5]  }
   0x6   :  { %s28_s18 = sshll.u32 %s165_s17, 4  ;;  %s29_s18 = int_to_ptr.vmem [resolvable:$true] %s28_s18 }
   0x7   :  { %31 = dma.hbm_to_vmem [thread:$0]  %s27_s16, 32, %s29_s18, [#allocation6]  }
   0x8   :  { %158 = dma.done.wait [#allocation3], 32  }
   0x9   :  { %159 = vsyncadd [#allocation3], 4294967264 }
   0xa   :  { %160 = dma.done.wait [#allocation6], 32  }
   0xb   :  { %161 = vsyncadd [#allocation6], 4294967264  ;;  %v42_v0 = vlaneseq  ;;  %v166_v2 = vmov 3.0   ;;  %v40_v4 = vld [vmem:[#allocation2] sm:$0x3]  ;;  %v167_v5 = vmov 0.25  }
   0xc   :  { %v41_v8 = vld [vmem:[#allocation5] sm:$0x3]  ;;  %vm58_vm2 = vcmask 1041408   ;;  %s168_s0 = smov [#allocation7]   ;;  %s70_s21 = sshll.u32 %s195_s2, 4  ;;  %s71_s21 = int_to_ptr.hbm [resolvable:$true] %s70_s21 }
   0xd   :  { %v43_v1 = vshrl.u32 %v42_v0, 7  ;;  %v50_v9 = vand.u32 127, %v42_v0  ;;  %s68_s1 = sshll.u32 %s168_s0, 4  ;;  %s69_s1 = int_to_ptr.vmem [resolvable:$true] %s68_s1 }
   0xf   :  { %vm44_vm0 = vcmp.eq.s32.totalorder %v43_v1, 0  ;;  %vm54_vm1 = vcmp.lt.s32.totalorder %v50_v9, 8 }
  0x10   :  { %v45_v3 = vsel %vm44_vm0, 12.0, %v166_v2  ;;  %v46_v6 = vsel %vm44_vm0, 1.5, %v167_v5 }
  0x11   :  { %v47_v7 = vmul.f32 %v45_v3, %v40_v4 }
  0x13   :  { %v48_v10 = vadd.f32 %v47_v7, %v46_v6 }
  0x15   :  { %v55_v11 = vsub.f32 %v48_v10, %v41_v8 }
  0x17   :  { %v56_v12 = vand.u32 2147483647, %v55_v11 }
  0x19   :  { %v57_v13 = vsel %vm54_vm1, %v56_v12, 0.0 }
  0x1a   :  { %v59_v14 = vsel %vm58_vm2, %v57_v13, 0.0 }
  0x1b   :  { %60 = vadd.xlane.f32.xlu0 %v59_v14 }
  0x8e   :  { %v61_v15 = vpop.xlane.xlu0 %60 }
  0x8f   :  { %62 = vst [vmem:[#allocation7] sm:$0x3] %v61_v15 }
  0x90   :  { %73 = dma.vmem_to_hbm [thread:$0]  %s69_s1, 32, %s71_s21, [#allocation4]  }
  0x91   :  { %162 = dma.done.wait [#allocation4], 32  }
  0x92   :  { %163 = vsyncadd [#allocation4], 4294967264 }
  0x93   :  { %78 = vsyncpa [#allocation3], 1 }
  0x94   :  { %79 = vsyncpa [#allocation6], 1 }
  0x95   :  { %80 = vsyncpa [#allocation4], 1 }

</bundles_post_ra>
